<compile_context>
chip_gen: v5e
topology: v5e:2x2
jax: 0.10.0
libtpu: 0.0.40
codegen_flags: <defaults>
</compile_context>

<pallas_src>
import functools

import jax
import jax.numpy as jnp
from jax.experimental import pallas as pl
from jax.experimental.pallas import tpu as pltpu


def _round_up(a, b):
    return ((a + b - 1) // b) * b


def _ln_packed_kernel(x_ref, w_ref, b_ref, avg_ref, seg_ref, segt_ref, o_ref,
                      *, inv_c):
    # x_ref: (tm, 128); each row holds P tokens of C channels (P*C == 128).
    x = x_ref[...].astype(jnp.float32)                               # (tm, 128)

    # Per-token mean broadcast to all of that token's lanes with ONE dense dot
    # against the resident block-diagonal averaging matrix (128, 128).
    mean_full = jnp.dot(x, avg_ref[...], preferred_element_type=jnp.float32)
    xc = x - mean_full

    # Per-token variance: narrow (tm, P) so the rsqrt on the EUP stays 1/P
    # wide, then broadcast back with one tiny dot.
    var = jnp.dot(xc * xc, seg_ref[...],
                  preferred_element_type=jnp.float32) * inv_c        # (tm, P)
    inv = jax.lax.rsqrt(var + 1e-5)                                  # (tm, P)
    inv_full = jnp.dot(inv, segt_ref[...],
                       preferred_element_type=jnp.float32)           # (tm, 128)

    o_ref[...] = (xc * inv_full * w_ref[...] + b_ref[...]).astype(o_ref.dtype)


def _ln_rows_kernel(x_ref, w_ref, b_ref, o_ref):
    # Fallback: one token per row (C >= 128 or 128 % C != 0).
    x = x_ref[...].astype(jnp.float32)                               # (tm, C)
    mean = jnp.mean(x, axis=-1, keepdims=True)
    xc = x - mean
    var = jnp.mean(xc * xc, axis=-1, keepdims=True)                  # biased
    inv = jax.lax.rsqrt(var + 1e-5)
    o_ref[...] = (xc * inv * w_ref[...] + b_ref[...]).astype(o_ref.dtype)


def withbias_layernorm(x, weight, bias, *, row_tile=4096):
    """LayerNorm over the last axis with learnable scale + shift.

    x: (..., C), weight: (C,), bias: (C,).
    """
    orig_shape = x.shape
    C = orig_shape[-1]
    N = 1
    for d in orig_shape[:-1]:
        N *= d
    x2 = x.reshape(N, C)

    # Lane packing factor: pack P tokens per 128-lane row when possible.
    if C < 128 and 128 % C == 0:
        P = 128 // C
    else:
        P = 1
    lanes = P * C

    # Only pad the (< P) ragged remainder tokens; the common case (N % P == 0)
    # is copy-free (reshape is a contiguous reinterpretation).
    N_tok = _round_up(N, P)
    if N_tok != N:
        x2 = jnp.pad(x2, ((0, N_tok - N), (0, 0)))
    R = N_tok // P
    xp = x2.reshape(R, lanes)

    # Biggest tile that fits the budget, but keep >= 2 grid steps so both v7x
    # TensorCores get work; tm stays a multiple of 8 (vreg sublanes).
    tm = min(row_tile, _round_up(max(-(-R // 2), 8), 8))
    grid = (pl.cdiv(R, tm),)

    # weight/bias replicated across the packed groups (lane l -> channel l % C).
    w_row = jnp.tile(weight.reshape(1, C).astype(jnp.float32), (1, P))
    b_row = jnp.tile(bias.reshape(1, C).astype(jnp.float32), (1, P))

    cost = pl.CostEstimate(
        flops=10 * N * C,
        transcendentals=N,
        bytes_accessed=2 * N * C * x.dtype.itemsize,
    )
    compiler_params = pltpu.CompilerParams(
        dimension_semantics=("parallel",),
        vmem_limit_bytes=48 * 1024 * 1024,
    )

    if P > 1:
        # Block-diagonal averaging matrix: avg[l, m] = (l//C == m//C) / C.
        lane_i = jax.lax.broadcasted_iota(jnp.int32, (lanes, lanes), 0)
        lane_j = jax.lax.broadcasted_iota(jnp.int32, (lanes, lanes), 1)
        avg = jnp.where(lane_i // C == lane_j // C, 1.0 / C, 0.0).astype(
            jnp.float32)                                            # (128, 128)
        # Segment-indicator matrix and its transpose for the variance path.
        lane_p = jax.lax.broadcasted_iota(jnp.int32, (lanes, P), 0)
        grp = jax.lax.broadcasted_iota(jnp.int32, (lanes, P), 1)
        seg = (lane_p // C == grp).astype(jnp.float32)              # (128, P)
        segt = seg.T                                                # (P, 128)

        kernel = functools.partial(_ln_packed_kernel, inv_c=1.0 / C)
        out = pl.pallas_call(
            kernel,
            out_shape=jax.ShapeDtypeStruct((R, lanes), x.dtype),
            grid=grid,
            in_specs=[
                pl.BlockSpec((tm, lanes), lambda i: (i, 0)),        # x tile
                pl.BlockSpec((1, lanes), lambda i: (0, 0)),         # weight
                pl.BlockSpec((1, lanes), lambda i: (0, 0)),         # bias
                pl.BlockSpec((lanes, lanes), lambda i: (0, 0)),     # avg matrix
                pl.BlockSpec((lanes, P), lambda i: (0, 0)),         # seg
                pl.BlockSpec((P, lanes), lambda i: (0, 0)),         # seg.T
            ],
            out_specs=pl.BlockSpec((tm, lanes), lambda i: (i, 0)),
            compiler_params=compiler_params,
            cost_estimate=cost,
        )(xp, w_row, b_row, avg, seg, segt)
    else:
        out = pl.pallas_call(
            _ln_rows_kernel,
            out_shape=jax.ShapeDtypeStruct((R, lanes), x.dtype),
            grid=grid,
            in_specs=[
                pl.BlockSpec((tm, lanes), lambda i: (i, 0)),        # x tile
                pl.BlockSpec((1, lanes), lambda i: (0, 0)),         # weight
                pl.BlockSpec((1, lanes), lambda i: (0, 0)),         # bias
            ],
            out_specs=pl.BlockSpec((tm, lanes), lambda i: (i, 0)),
            compiler_params=compiler_params,
            cost_estimate=cost,
        )(xp, w_row, b_row)

    out = out.reshape(N_tok, C)
    if N_tok != N:
        out = out[:N]
    return out.reshape(orig_shape)


if __name__ == "__main__":
    # Token layout the module is used with: (B, H*W, C).
    B, H, W, C = 2, 16, 16, 32
    key = jax.random.PRNGKey(0)
    x = jax.random.normal(key, (B, H * W, C), dtype=jnp.float32)

    # Module's parameter init: weight = ones, bias = zeros.
    weight = jnp.ones((C,), dtype=jnp.float32)
    bias = jnp.zeros((C,), dtype=jnp.float32)

    out = jax.block_until_ready(withbias_layernorm(x, weight, bias))

    mu = jnp.mean(x, axis=-1, keepdims=True)
    sigma = jnp.var(x, axis=-1, keepdims=True)              # unbiased=False
    ref = (x - mu) / jnp.sqrt(sigma + 1e-5) * weight + bias
    assert out.shape == x.shape and out.dtype == x.dtype
    assert jnp.allclose(out, ref, atol=1e-5, rtol=1e-5)

    # Second check: non-trivial affine params + ragged token count (needs the
    # small remainder pad/slice path and a partial boundary block).
    k1, k2, k3 = jax.random.split(jax.random.PRNGKey(0), 3)
    x2 = jax.random.normal(k1, (3, 37, C), dtype=jnp.float32)
    w2 = 1.0 + 0.1 * jax.random.normal(k2, (C,), dtype=jnp.float32)
    b2 = 0.1 * jax.random.normal(k3, (C,), dtype=jnp.float32)
    out2 = jax.block_until_ready(withbias_layernorm(x2, w2, b2))
    mu2 = jnp.mean(x2, axis=-1, keepdims=True)
    sg2 = jnp.var(x2, axis=-1, keepdims=True)
    ref2 = (x2 - mu2) / jnp.sqrt(sg2 + 1e-5) * w2 + b2
    assert jnp.allclose(out2, ref2, atol=1e-5, rtol=1e-5)

    print("KERNEL_OK")
</pallas_src>

<mosaic_0001>
module attributes {stable_mosaic.version = 11 : i64} {
  func.func @_ln_packed_kernel(%arg0: i32, %arg1: memref<64x128xf32, #tpu.memory_space<vmem>>, %arg2: memref<1x128xf32, #tpu.memory_space<vmem>>, %arg3: memref<1x128xf32, #tpu.memory_space<vmem>>, %arg4: memref<128x128xf32, #tpu.memory_space<vmem>>, %arg5: memref<128x4xf32, #tpu.memory_space<vmem>>, %arg6: memref<4x128xf32, #tpu.memory_space<vmem>>, %arg7: memref<64x128xf32, #tpu.memory_space<vmem>>) attributes {dimension_semantics = [#tpu.dimension_semantics<parallel>], iteration_bounds = array<i64: 2>, scalar_prefetch = 0 : i64, scratch_operands = 0 : i64, tpu.core_type = #tpu.core_type<tc>, window_params = [{transform_indices = @transform_0, window_bounds = array<i64: 64, 128>}, {pipeline_mode = #tpu.pipeline_mode<synchronous>, transform_indices = @transform_1, window_bounds = array<i64: 1, 128>}, {pipeline_mode = #tpu.pipeline_mode<synchronous>, transform_indices = @transform_2, window_bounds = array<i64: 1, 128>}, {pipeline_mode = #tpu.pipeline_mode<synchronous>, transform_indices = @transform_3, window_bounds = array<i64: 128, 128>}, {pipeline_mode = #tpu.pipeline_mode<synchronous>, transform_indices = @transform_4, window_bounds = array<i64: 128, 4>}, {pipeline_mode = #tpu.pipeline_mode<synchronous>, transform_indices = @transform_5, window_bounds = array<i64: 4, 128>}, {transform_indices = @transform_6, window_bounds = array<i64: 64, 128>}]} {
    %c0 = arith.constant 0 : index
    %c0_0 = arith.constant 0 : index
    %0 = vector.load %arg1[%c0, %c0_0] : memref<64x128xf32, #tpu.memory_space<vmem>>, vector<64x128xf32>
    %c0_1 = arith.constant 0 : index
    %c0_2 = arith.constant 0 : index
    %1 = vector.load %arg4[%c0_1, %c0_2] : memref<128x128xf32, #tpu.memory_space<vmem>>, vector<128x128xf32>
    %cst = arith.constant dense<0.000000e+00> : vector<64x128xf32>
    %2 = tpu.matmul %0, %1, %cst {dimension_numbers = #tpu.dot_dimension_numbers<[1], [0], [0], [1], [0, 0, 1, 1], [], []>} : vector<64x128xf32>, vector<128x128xf32>, vector<64x128xf32> -> vector<64x128xf32>
    %3 = arith.subf %0, %2 : vector<64x128xf32>
    %4 = arith.mulf %3, %3 : vector<64x128xf32>
    %c0_3 = arith.constant 0 : index
    %c0_4 = arith.constant 0 : index
    %5 = vector.load %arg5[%c0_3, %c0_4] : memref<128x4xf32, #tpu.memory_space<vmem>>, vector<128x4xf32>
    %cst_5 = arith.constant dense<0.000000e+00> : vector<64x4xf32>
    %6 = tpu.matmul %4, %5, %cst_5 {dimension_numbers = #tpu.dot_dimension_numbers<[1], [0], [0], [1], [0, 0, 1, 1], [], []>} : vector<64x128xf32>, vector<128x4xf32>, vector<64x4xf32> -> vector<64x4xf32>
    %cst_6 = arith.constant 3.125000e-02 : f32
    %7 = vector.broadcast %cst_6 : f32 to vector<64x4xf32>
    %8 = arith.mulf %6, %7 : vector<64x4xf32>
    %cst_7 = arith.constant 9.99999974E-6 : f32
    %9 = vector.broadcast %cst_7 : f32 to vector<64x4xf32>
    %10 = arith.addf %8, %9 : vector<64x4xf32>
    %11 = math.rsqrt %10 : vector<64x4xf32>
    %c0_8 = arith.constant 0 : index
    %c0_9 = arith.constant 0 : index
    %12 = vector.load %arg6[%c0_8, %c0_9] : memref<4x128xf32, #tpu.memory_space<vmem>>, vector<4x128xf32>
    %cst_10 = arith.constant dense<0.000000e+00> : vector<64x128xf32>
    %13 = tpu.matmul %11, %12, %cst_10 {dimension_numbers = #tpu.dot_dimension_numbers<[1], [0], [0], [1], [0, 0, 1, 1], [], []>} : vector<64x4xf32>, vector<4x128xf32>, vector<64x128xf32> -> vector<64x128xf32>
    %14 = arith.mulf %3, %13 : vector<64x128xf32>
    %c0_11 = arith.constant 0 : index
    %c0_12 = arith.constant 0 : index
    %15 = vector.load %arg2[%c0_11, %c0_12] : memref<1x128xf32, #tpu.memory_space<vmem>>, vector<1x128xf32>
    %16 = vector.broadcast %15 : vector<1x128xf32> to vector<64x128xf32>
    %17 = arith.mulf %14, %16 : vector<64x128xf32>
    %c0_13 = arith.constant 0 : index
    %c0_14 = arith.constant 0 : index
    %18 = vector.load %arg3[%c0_13, %c0_14] : memref<1x128xf32, #tpu.memory_space<vmem>>, vector<1x128xf32>
    %19 = vector.broadcast %18 : vector<1x128xf32> to vector<64x128xf32>
    %20 = arith.addf %17, %19 : vector<64x128xf32>
    %c0_15 = arith.constant 0 : index
    %c0_16 = arith.constant 0 : index
    %21 = vector.load %arg7[%c0_15, %c0_16] : memref<64x128xf32, #tpu.memory_space<vmem>>, vector<64x128xf32>
    tpu.vector_store %arg7[%c0_15, %c0_16], %20 {strides = array<i32>} : memref<64x128xf32, #tpu.memory_space<vmem>>, vector<64x128xf32>,
    return
  }
  func.func @transform_0(%arg0: i32) -> (i32, i32) {
    %c0_i32 = arith.constant 0 : i32
    %c0_i32_0 = arith.constant 0 : i32
    return %arg0, %c0_i32 : i32, i32
  }
  func.func @transform_1(%arg0: i32) -> (i32, i32) {
    %c0_i32 = arith.constant 0 : i32
    %c0_i32_0 = arith.constant 0 : i32
    %c0_i32_1 = arith.constant 0 : i32
    return %c0_i32, %c0_i32_0 : i32, i32
  }
  func.func @transform_2(%arg0: i32) -> (i32, i32) {
    %c0_i32 = arith.constant 0 : i32
    %c0_i32_0 = arith.constant 0 : i32
    %c0_i32_1 = arith.constant 0 : i32
    return %c0_i32, %c0_i32_0 : i32, i32
  }
  func.func @transform_3(%arg0: i32) -> (i32, i32) {
    %c0_i32 = arith.constant 0 : i32
    %c0_i32_0 = arith.constant 0 : i32
    %c0_i32_1 = arith.constant 0 : i32
    return %c0_i32, %c0_i32_0 : i32, i32
  }
  func.func @transform_4(%arg0: i32) -> (i32, i32) {
    %c0_i32 = arith.constant 0 : i32
    %c0_i32_0 = arith.constant 0 : i32
    %c0_i32_1 = arith.constant 0 : i32
    return %c0_i32, %c0_i32_0 : i32, i32
  }
  func.func @transform_5(%arg0: i32) -> (i32, i32) {
    %c0_i32 = arith.constant 0 : i32
    %c0_i32_0 = arith.constant 0 : i32
    %c0_i32_1 = arith.constant 0 : i32
    return %c0_i32, %c0_i32_0 : i32, i32
  }
  func.func @transform_6(%arg0: i32) -> (i32, i32) {
    %c0_i32 = arith.constant 0 : i32
    %c0_i32_0 = arith.constant 0 : i32
    return %arg0, %c0_i32 : i32, i32
  }
}

</mosaic_0001>

<bundles_post_ra>
// kernel: tpu_custom_call.1
= control target key start
LH: loop header
LB: loop body
LE: loop exit
PB: predicated region body
PF: predicated region fallthrough
CT: control target
= control target key end

     0   :  { %11 = vsyncpa [#allocation3], 0  ;;  %s1287_s0 = inlined_call_operand.vmem [shape: f32[128,128], index: 0, kind: input, shape index: {}]   ;;  %s1288_s1 = inlined_call_operand.hbm [shape: f32[1,128], index: 1, kind: input, shape index: {}]   ;;  %s1289_s2 = inlined_call_operand.vmem [shape: f32[1,128], index: 2, kind: input, shape index: {}]   ;;  %s1290_s3 = inlined_call_operand.hbm [shape: f32[128,128], index: 3, kind: input, shape index: {}]   ;;  %s1291_s4 = inlined_call_operand.vmem [shape: f32[128,4], index: 4, kind: input, shape index: {}]   ;;  %s1292_s5 = inlined_call_operand.vmem [shape: f32[4,128], index: 5, kind: input, shape index: {}]   ;;  %s1293_s6 = inlined_call_operand.hbm [shape: f32[128,128], index: 6, kind: output, shape index: {}]  }
   0x1   :  { %12 = vsyncpa [#allocation6], 0 }
   0x2   :  { %13 = vsyncpa [#allocation4], 0 }
   0x3   :  { %15 = vsyncpa [#allocation4 + $0x1], 0  ;;  %s1043_s21 = smov 0   ;;  %s1045_s22 = smov 0  }
   0x4   :  { %s1047_s23 = smov 0   ;;  %s1049_s24 = smov 0  }
   0x5 LB: > { %s1064_s25 = sadd.s32 4294967295, %s1000_s24   ;;  %s730_s26 = sadd.s32 4294967294, %s1000_s24   ;;  %s1000_s24 = sphi %s1049_s24, %s1300_s24   ;;  %s996_s23 = sphi %s1047_s23, %s1299_s23   ;;  %s992_s22 = sphi %s1045_s22, %s1298_s22   ;;  %s988_s21 = sphi %s1043_s21, %s1297_s21  }
   0x6   : > { %s1068_s27 = sadd.s32 1, %s1000_s24   ;;  %s159_s28 = sadd.s32 1, %s996_s23 }
   0x7   : > { %s156_s29 = ssub.s32 %s1000_s24, %s1068_s27  ;;  %p169_p0 = scmp.ne.s32.totalorder %s996_s23, %s992_s22 }
   0x8   : > { %p157_p1 = scmp.eq.s32.totalorder %s156_s29, 0  ;;  %p170_p2 = scmp.eq.s32.totalorder %s1064_s25, 1 }
   0x9   : > { %p175_p3 = scmp.ne.s32.totalorder %s992_s22, %s988_s21  ;;  %p176_p4 = scmp.eq.s32.totalorder %s730_s26, 1 }
   0xa   : > { %s1079_s30 = scalar_select %p157_p1, %s996_s23, %s159_s28  }
   0xb   : > { %p1081_p5 = por %p170_p2, %p169_p0  ;;  %p1085_p6 = por %p176_p4, %p175_p3 }
   0xc   : > { %p731_p7 = scmp.ge.s32.totalorder %s1000_s24, 1  ;;  %p183_p8 = scmp.lt.s32.totalorder %s1000_s24, 3 }
   0xd   : > { %p809_p9 = scmp.eq.s32.totalorder %s1064_s25, 0  ;;  %s195_s12 = sshll.u32 %s1288_s1, 4  ;;  %s196_s12 = int_to_ptr.hbm [resolvable:$true] %s195_s12 }
   0xe   : > { %p1092_p10 = pnand %p731_p7, %p183_p8  ;;  %s1002_s13 = smov [#allocation2]  }
   0xf   : > { %s197_s14 = sshll.u32 %s1002_s13, 4  ;;  %s209_s17 = sshll.u32 %s1290_s3, 4  ;;  %s198_s14 = int_to_ptr.vmem [resolvable:$true] %s197_s14  ;;  %s210_s17 = int_to_ptr.hbm [resolvable:$true] %s209_s17 }
  0x10   : > { %p798_p11 = pneg %p1092_p10  ;;  %s1003_s18 = smov [#allocation5]  }
  0x11   : > { %s211_s19 = sshll.u32 %s1003_s18, 4  ;;  %s1004_s20 = smov 128   ;;  %s212_s19 = int_to_ptr.vmem [resolvable:$true] %s211_s19 }
  0x12   : > { %p799_p12 = pnand %p809_p9, %p798_p11  ;;  %s1005_s26 = smov 8  }
  0x13   : > { %242 = sbr.rel (%p1092_p10) target bundleno = 535 (0x217), region = 44 }
  0x14   : > { %801 = dma.hbm_to_vmem [thread:$0]  (!%p799_p12), %s196_s12, 16, %s198_s14, [#allocation3]  }
  0x15   : > { %804 = dma.hbm_to_vmem [thread:$0]  (!%p799_p12), %s210_s17, 2048, %s212_s19, [#allocation6], %s1004_s20, %s1004_s20, %s1005_s26  }
  0x18   : > { %975 = dma.done.wait (%p809_p9), [#allocation3], 16  }
  0x19   : > { %977 = vsyncadd (%p809_p9), [#allocation3], 4294967280 }
  0x1a   : > { %979 = dma.done.wait (%p809_p9), [#allocation6], 2048  }
  0x1b   : > { %981 = vsyncadd (%p809_p9), [#allocation6], 4294965248  ;;  %v308_v0 = vld [vmem:[#allocation5 + $0x78] sm:$0xff]  ;;  %v307_v1 = vld [vmem:[#allocation5 + $0x70] sm:$0xff]  ;;  %s739_s28 = sshll.u32 %s1064_s25, 3  ;;  %vm545_vm0 = vcmask 1043456  }
  0x1c   : > { %309 = vmatpush.msra.mxu0 %v308_v0  ;;  %756 = vmatpush.msra.mxu3 %v308_v0  ;;  %v306_v2 = vld [vmem:[#allocation5 + $0x68] sm:$0xff]  ;;  %v305_v3 = vld [vmem:[#allocation5 + $0x60] sm:$0xff]  ;;  %v304_v4 = vld [vmem:[#allocation5 + $0x58] sm:$0xff]  ;;  %p279_p13 = scmp.lt.s32.totalorder %s739_s28, 15  ;;  %vm520_vm3 = vcmask 31744   ;;  %s275_s17 = sand.u32 1, %s992_s22  }
  0x1d   : > { %v303_v5 = vld [vmem:[#allocation5 + $0x50] sm:$0xff]  ;;  %v302_v6 = vld [vmem:[#allocation5 + $0x48] sm:$0xff]  ;;  %v301_v7 = vld [vmem:[#allocation5 + $0x40] sm:$0xff]  ;;  %s738_s18 = sshll.u32 %s275_s17, 6  ;;  %s631_s14 = scalar_lea.sflag [#allocation4], %s275_s17 }
  0x1e   : > { %310 = vmatpush.msra.mxu0 %v307_v1  ;;  %757 = vmatpush.msra.mxu3 %v307_v1  ;;  %v300_v8 = vld [vmem:[#allocation5 + $0x38] sm:$0xff]  ;;  %v299_v9 = vld [vmem:[#allocation5 + $0x30] sm:$0xff]  ;;  %v298_v10 = vld [vmem:[#allocation5 + $0x28] sm:$0xff]  ;;  %s1302_s28 = smov (!%p279_p13, %s739_s28), 15  ;;  %s1236_s26 = scalar_lea.vmem [#allocation7], %s738_s18 }
  0x1f   : > { %v297_v11 = vld [vmem:[#allocation5 + $0x20] sm:$0xff]  ;;  %v296_v12 = vld [vmem:[#allocation5 + $0x18] sm:$0xff]  ;;  %s740_s29 = sshll.u32 %s1302_s28, 3  ;;  %v295_v13 = vld [vmem:[#allocation5 + $0x10] sm:$0xff]  ;;  %s755_s28 = sshll.u32 %s1064_s25, 6 }
  0x20   : > { %311 = vmatpush.msra.mxu0 %v306_v2  ;;  %758 = vmatpush.msra.mxu3 %v306_v2  ;;  %v294_v14 = vld [vmem:[#allocation5 + $0x8] sm:$0xff]  ;;  %s1120_s11 = scalar_lea.vmem %s1287_s0, %s740_s29  ;;  %v293_v15 = vld [vmem:[#allocation5] sm:$0xff]  ;;  %v381_v18 = vld [vmem:[%s1291_s4 + $0x78] sm:$0xff]  ;;  %s642_s10 = scalar_lea.hbm %s1293_s6, %s755_s28 }
  0x21   : > { %v1123_v16 = vld [vmem:[%s1120_s11] sm:$0xff]  ;;  %v1126_v17 = vld [vmem:[%s1120_s11 + $0x28] sm:$0xff]  ;;  %v380_v19 = vld [vmem:[%s1291_s4 + $0x70] sm:$0xff]  ;;  %382 = vmatpush.msra.mxu1 %v381_v18  ;;  %s643_s12 = sshll.u32 %s1236_s26, 4  ;;  %s645_s13 = sshll.u32 %s642_s10, 4  ;;  %s644_s12 = int_to_ptr.vmem [resolvable:$true] %s643_s12  ;;  %s646_s13 = int_to_ptr.hbm [resolvable:$true] %s645_s13 }
  0x22   : > { %312 = vmatpush.msra.mxu0 %v305_v3  ;;  %759 = vmatpush.msra.mxu3 %v305_v3  ;;  %v379_v20 = vld [vmem:[%s1291_s4 + $0x68] sm:$0xff]  ;;  %v378_v21 = vld [vmem:[%s1291_s4 + $0x60] sm:$0xff]  ;;  %v291_v23 = vld [vmem:[%s1120_s11 + $0x30] sm:$0xff]  ;;  %s944_s25 = sshra.s32 %s646_s13, 4  ;;  %s950_s18 = scalar_lea.hbm %s1293_s6, 128  ;;  %s945_s25 = int_to_ptr.hbm [resolvable:$true] %s944_s25 }
  0x23   : > { %383 = vmatpush.msra.mxu1 %v380_v19  ;;  %v286_v22 = vld [vmem:[%s1120_s11 + $0x8] sm:$0xff]  ;;  %v377_v24 = vld [vmem:[%s1291_s4 + $0x58] sm:$0xff]  ;;  %v376_v25 = vld [vmem:[%s1291_s4 + $0x50] sm:$0xff]  ;;  %s946_s15 = scalar_lea.hbm %s945_s25, 64  ;;  %p951_p3 = scmp.lt.s32.totalorder %s945_s25, %s1293_s6 }
  0x24   : > { %313 = vmatpush.msra.mxu0 %v304_v4  ;;  %760 = vmatpush.msra.mxu3 %v304_v4  ;;  %v375_v26 = vld [vmem:[%s1291_s4 + $0x48] sm:$0xff]  ;;  %v374_v27 = vld [vmem:[%s1291_s4 + $0x40] sm:$0xff]  ;;  %v287_v28 = vld [vmem:[%s1120_s11 + $0x10] sm:$0xff]  ;;  %p947_p0 = scmp.ne.s32.totalorder %s945_s25, %s946_s15  ;;  %p952_p4 = scmp.lt.s32.totalorder %s950_s18, %s946_s15 }
  0x25   : > { %384 = vmatpush.msra.mxu1 %v379_v20  ;;  %v292_v29 = vld [vmem:[%s1120_s11 + $0x38] sm:$0xff]  ;;  %v372_v31 = vld [vmem:[%s1291_s4 + $0x30] sm:$0xff]  ;;  %v371_v32 = vld [vmem:[%s1291_s4 + $0x28] sm:$0xff] }
  0x26   : > { %314 = vmatpush.msra.mxu0 %v303_v5  ;;  %761 = vmatpush.msra.mxu3 %v303_v5  ;;  %v373_v30 = vld [vmem:[%s1291_s4 + $0x38] sm:$0xff]  ;;  %v370_v33 = vld [vmem:[%s1291_s4 + $0x20] sm:$0xff]  ;;  %v368_v37 = vld [vmem:[%s1291_s4 + $0x10] sm:$0xff]  ;;  %p948_p1 = pnand %p947_p0, %p1081_p5  ;;  %p953_p7 = por %p952_p4, %p951_p3 }
  0x27   : > { %385 = vmatpush.msra.mxu1 %v378_v21  ;;  %v288_v34 = vld [vmem:[%s1120_s11 + $0x18] sm:$0xff]  ;;  %v289_v36 = vld [vmem:[%s1120_s11 + $0x20] sm:$0xff]  ;;  %v367_v38 = vld [vmem:[%s1291_s4 + $0x8] sm:$0xff] }
  0x28   : > { %315 = vmatpush.msra.mxu0 %v302_v6  ;;  %762 = vmatpush.msra.mxu3 %v302_v6  ;;  %v369_v35 = vld [vmem:[%s1291_s4 + $0x18] sm:$0xff]  ;;  %v366_v39 = vld [vmem:[%s1291_s4] sm:$0xff]  ;;  %p949_p2 = pneg %p948_p1 }
  0x29   : > { %386 = vmatpush.msra.mxu1 %v377_v24  ;;  %v519_v0 = vld [vmem:[%s1292_s5] sm:$0xf] }
  0x2a   : > { %316 = vmatpush.msra.mxu0 %v301_v7  ;;  %763 = vmatpush.msra.mxu3 %v301_v7  ;;  %p954_p8 = pnand %p953_p7, %p949_p2 }
  0x2b   : > { %387 = vmatpush.msra.mxu1 %v376_v25  ;;  %741 = vmatpush.msk.msra.mxu2 %vm545_vm0, %v519_v0 }
  0x2c   : > { %317 = vmatpush.msra.mxu0 %v300_v8  ;;  %764 = vmatpush.msra.mxu3 %v300_v8 }
  0x2d   : > { %388 = vmatpush.msra.mxu1 %v375_v26 }
  0x2e   : > { %318 = vmatpush.msra.mxu0 %v299_v9  ;;  %765 = vmatpush.msra.mxu3 %v299_v9 }
  0x2f   : > { %389 = vmatpush.msra.mxu1 %v374_v27 }
  0x30   : > { %319 = vmatpush.msra.mxu0 %v298_v10  ;;  %766 = vmatpush.msra.mxu3 %v298_v10 }
  0x31   : > { %390 = vmatpush.msra.mxu1 %v373_v30 }
  0x32   : > { %320 = vmatpush.msra.mxu0 %v297_v11  ;;  %767 = vmatpush.msra.mxu3 %v297_v11 }
  0x33   : > { %391 = vmatpush.msra.mxu1 %v372_v31 }
  0x34   : > { %321 = vmatpush.msra.mxu0 %v296_v12  ;;  %768 = vmatpush.msra.mxu3 %v296_v12 }
  0x35   : > { %392 = vmatpush.msra.mxu1 %v371_v32 }
  0x36   : > { %322 = vmatpush.msra.mxu0 %v295_v13  ;;  %769 = vmatpush.msra.mxu3 %v295_v13 }
  0x37   : > { %393 = vmatpush.msra.mxu1 %v370_v33 }
  0x38   : > { %323 = vmatpush.msra.mxu0 %v294_v14  ;;  %770 = vmatpush.msra.mxu3 %v294_v14 }
  0x39   : > { %394 = vmatpush.msra.mxu1 %v369_v35 }
  0x3a   : > { %324 = vmatpush.msra.mxu0 %v293_v15  ;;  %771 = vmatpush.msra.mxu3 %v293_v15 }
  0x3b   : > { %325 = vmatmul.f32.vlgmr.msra.gmra.mxu0 %v1123_v16  ;;  %340 = vmatmul.f32.vlgmr.msra.gmra.mxu3 %v1126_v17 }
  0x3c   : > { %772 = vmatpush.msrb.mxu3 %v381_v18  ;;  %395 = vmatpush.msra.mxu1 %v368_v37 }
  0x3e   : > { %773 = vmatpush.msrb.mxu3 %v380_v19  ;;  %396 = vmatpush.msra.mxu1 %v367_v38 }
  0x40   : > { %774 = vmatpush.msrb.mxu3 %v379_v20  ;;  %397 = vmatpush.msra.mxu1 %v366_v39 }
  0x42   : > { %775 = vmatpush.msrb.mxu3 %v378_v21 }
  0x43   : > { %328 = vmatmul.f32.gmra.mxu0 %v286_v22  ;;  %343 = vmatmul.f32.gmra.mxu3 %v291_v23 }
  0x44   : > { %776 = vmatpush.msrb.mxu3 %v377_v24 }
  0x46   : > { %777 = vmatpush.msrb.mxu3 %v376_v25 }
  0x48   : > { %778 = vmatpush.msrb.mxu3 %v375_v26 }
  0x4a   : > { %779 = vmatpush.msrb.mxu3 %v374_v27 }
  0x4b   : > { %331 = vmatmul.f32.gmra.mxu0 %v287_v28  ;;  %346 = vmatmul.f32.gmra.mxu3 %v292_v29 }
  0x4c   : > { %780 = vmatpush.msrb.mxu3 %v373_v30 }
  0x4e   : > { %781 = vmatpush.msrb.mxu3 %v372_v31 }
  0x50   : > { %782 = vmatpush.msrb.mxu3 %v371_v32 }
  0x52   : > { %783 = vmatpush.msrb.mxu3 %v370_v33 }
  0x53   : > { %334 = vmatmul.f32.gmra.mxu0 %v288_v34 }
  0x54   : > { %784 = vmatpush.msrb.mxu3 %v369_v35 }
  0x56   : > { %785 = vmatpush.msrb.mxu3 %v368_v37 }
  0x58   : > { %786 = vmatpush.msrb.mxu3 %v367_v38 }
  0x5a   : > { %787 = vmatpush.msrb.mxu3 %v366_v39 }
  0x5b   : > { %337 = vmatmul.f32.gmra.mxu0 %v289_v36 }
  0xb8   : > { %v326_v40 = vpop.f32.mrf.mxu0 }
  0xb9   : > { %v1185_v41 = vsub.f32 %v1123_v16, %v326_v40 }
  0xbb   : > { %v358_v42 = vmul.f32 %v1185_v41, %v1185_v41 }
  0xbd   : > { %398 = vmatmul.f32.vlgmr.msra.gmra.mxu1 %v358_v42 }
  0xbe   : > { %v341_v43 = vpop.f32.mrf.mxu3 }
  0xbf   : > { %v1214_v62 = vsub.f32 %v1126_v17, %v341_v43 }
  0xc0   : > { %v329_v44 = vpop.f32.mrf.mxu0 }
  0xc1   : > { %v1189_v45 = vsub.f32 %v286_v22, %v329_v44  ;;  %v363_v63 = vmul.f32 %v1214_v62, %v1214_v62 }
  0xc3   : > { %v359_v46 = vmul.f32 %v1189_v45, %v1189_v45 }
  0xc5   : > { %401 = vmatmul.f32.gmra.mxu1 %v359_v46 }
  0xc6   : > { %v344_v47 = vpop.f32.mrf.mxu3 }
  0xc7   : > { %v1193_v48 = vsub.f32 %v291_v23, %v344_v47 }
  0xc8   : > { %v332_v49 = vpop.f32.mrf.mxu0 }
  0xc9   : > { %v1195_v50 = vsub.f32 %v287_v28, %v332_v49  ;;  %v364_v51 = vmul.f32 %v1193_v48, %v1193_v48 }
  0xcb   : > { %v360_v52 = vmul.f32 %v1195_v50, %v1195_v50  ;;  %416 = vmatmul.f32.vlgmr.msrb.gmra.mxu3 %v364_v51 }
  0xcd   : > { %404 = vmatmul.f32.gmra.mxu1 %v360_v52 }
  0xce   : > { %v347_v53 = vpop.f32.mrf.mxu3 }
  0xcf   : > { %v1201_v54 = vsub.f32 %v292_v29, %v347_v53 }
  0xd0   : > { %v335_v55 = vpop.f32.mrf.mxu0 }
  0xd1   : > { %v1203_v56 = vsub.f32 %v288_v34, %v335_v55  ;;  %v365_v57 = vmul.f32 %v1201_v54, %v1201_v54 }
  0xd3   : > { %v361_v58 = vmul.f32 %v1203_v56, %v1203_v56  ;;  %419 = vmatmul.f32.gmra.mxu3 %v365_v57 }
  0xd5   : > { %407 = vmatmul.f32.gmra.mxu1 %v361_v58 }
  0xd8   : > { %v338_v59 = vpop.f32.mrf.mxu0 }
  0xd9   : > { %v1209_v60 = vsub.f32 %v289_v36, %v338_v59 }
  0xdb   : > { %v362_v61 = vmul.f32 %v1209_v60, %v1209_v60 }
  0xdd   : > { %410 = vmatmul.f32.gmra.mxu1 %v362_v61 }
  0xe5   : > { %413 = vmatmul.f32.gmra.mxu1 %v363_v63 }
 0x13a   : > { %v399_v1 = vpop.f32.mrf.mxu1 }
 0x13b   : > { %v423_v2 = vmul.f32 0.03125, %v399_v1 }
 0x13d   : > { %v431_v3 = vadd.f32 1e-05, %v423_v2 }
 0x13f   : > { %854 = vrsqrt.f32 %v431_v3  ;;  %vm445_vm2 = vweird.f32 %v431_v3 }
 0x142   : > { %v402_v4 = vpop.f32.mrf.mxu1 }
 0x143   : > { %v424_v5 = vmul.f32 0.03125, %v402_v4 }
 0x145   : > { %v855_v6 = vpop.eup %854  ;;  %v432_v7 = vadd.f32 1e-05, %v424_v5 }
 0x146   : > { %v440_v8 = vmul.f32 %v855_v6, %v431_v3  ;;  %vm446_vm1 = vweird.f32 %v855_v6 }
 0x147   : > { %856 = vrsqrt.f32 %v432_v7  ;;  %vm447_vm4 = vmor %vm445_vm2, %vm446_vm1  ;;  %vm455_vm6 = vweird.f32 %v432_v7 }
 0x148   : > { %v441_v9 = vmul.f32 %v855_v6, %v440_v8 }
 0x14a   : > { %v442_v10 = vmul.f32 0.5, %v441_v9  ;;  %v405_v11 = vpop.f32.mrf.mxu1 }
 0x14b   : > { %v425_v12 = vmul.f32 0.03125, %v405_v11 }
 0x14c   : > { %v443_v13 = vsub.f32 1.5, %v442_v10 }
 0x14d   : > { %v857_v14 = vpop.eup %856  ;;  %v433_v15 = vadd.f32 1e-05, %v425_v12 }
 0x14e   : > { %v450_v16 = vmul.f32 %v857_v14, %v432_v7  ;;  %v444_v17 = vmul.f32 %v855_v6, %v443_v13  ;;  %vm456_vm5 = vweird.f32 %v857_v14  ;;  %v417_v28 = vpop.f32.mrf.mxu3 }
 0x14f   : > { %858 = vrsqrt.f32 %v433_v15  ;;  %vm457_vm7 = vmor %vm455_vm6, %vm456_vm5  ;;  %v429_v34 = vmul.f32 0.03125, %v417_v28  ;;  %vm465_vm9 = vweird.f32 %v433_v15  ;;  %v853_v28 = vld [vmem:[%s1289_s2] ss:$0 sm:$0xff] }
 0x150   : > { %v451_v18 = vmul.f32 %v857_v14, %v450_v16  ;;  %v448_v19 = vsel %vm447_vm4, %v855_v6, %v444_v17 }
 0x151   : > { %742 = vmatmul.msk.f32.vlgmr.msra.gmra.mxu2 %vm520_vm3, %v448_v19  ;;  %v437_v40 = vadd.f32 1e-05, %v429_v34 }
 0x152   : > { %v452_v20 = vmul.f32 0.5, %v451_v18  ;;  %v408_v21 = vpop.f32.mrf.mxu1 }
 0x153   : > { %v426_v22 = vmul.f32 0.03125, %v408_v21  ;;  %vm505_vm5 = vweird.f32 %v437_v40 }
 0x154   : > { %v453_v23 = vsub.f32 1.5, %v452_v20 }
 0x155   : > { %v859_v24 = vpop.eup %858  ;;  %v434_v25 = vadd.f32 1e-05, %v426_v22 }
 0x156   : > { %v460_v26 = vmul.f32 %v859_v24, %v433_v15  ;;  %v454_v27 = vmul.f32 %v857_v14, %v453_v23  ;;  %vm466_vm8 = vweird.f32 %v859_v24  ;;  %v420_v44 = vpop.f32.mrf.mxu3 }
 0x157   : > { %860 = vrsqrt.f32 %v434_v25  ;;  %vm467_vm10 = vmor %vm465_vm9, %vm466_vm8  ;;  %v430_v51 = vmul.f32 0.03125, %v420_v44  ;;  %vm475_vm12 = vweird.f32 %v434_v25 }
 0x158   : > { %v461_v29 = vmul.f32 %v859_v24, %v460_v26  ;;  %v458_v30 = vsel %vm457_vm7, %v857_v14, %v454_v27 }
 0x159   : > { %743 = vmatmul.msk.f32.gmra.mxu2 %vm520_vm3, %v458_v30  ;;  %v438_v59 = vadd.f32 1e-05, %v430_v51 }
 0x15a   : > { %v462_v31 = vmul.f32 0.5, %v461_v29  ;;  %v411_v32 = vpop.f32.mrf.mxu1 }
 0x15b   : > { %v427_v33 = vmul.f32 0.03125, %v411_v32  ;;  %vm515_vm8 = vweird.f32 %v438_v59 }
 0x15c   : > { %v463_v35 = vsub.f32 1.5, %v462_v31 }
 0x15d   : > { %v861_v36 = vpop.eup %860  ;;  %v435_v37 = vadd.f32 1e-05, %v427_v33 }
 0x15e   : > { %v470_v38 = vmul.f32 %v861_v36, %v434_v25  ;;  %v464_v39 = vmul.f32 %v859_v24, %v463_v35  ;;  %vm476_vm11 = vweird.f32 %v861_v36  ;;  %v852_v25 = vld [vmem:[#allocation2] ss:$0 sm:$0xff] }
 0x15f   : > { %862 = vrsqrt.f32 %v435_v37  ;;  %vm477_vm13 = vmor %vm475_vm12, %vm476_vm11  ;;  %vm485_vm15 = vweird.f32 %v435_v37 }
 0x160   : > { %v471_v42 = vmul.f32 %v861_v36, %v470_v38  ;;  %v468_v43 = vsel %vm467_vm10, %v859_v24, %v464_v39  ;;  %864 = vrsqrt.f32 %v437_v40 }
 0x161   : > { %744 = vmatmul.msk.f32.gmra.mxu2 %vm520_vm3, %v468_v43 }
 0x162   : > { %v472_v46 = vmul.f32 0.5, %v471_v42  ;;  %v414_v47 = vpop.f32.mrf.mxu1 }
 0x163   : > { %v428_v49 = vmul.f32 0.03125, %v414_v47 }
 0x164   : > { %v473_v52 = vsub.f32 1.5, %v472_v46 }
 0x165   : > { %v863_v53 = vpop.eup %862  ;;  %v436_v55 = vadd.f32 1e-05, %v428_v49 }
 0x166   : > { %v480_v57 = vmul.f32 %v863_v53, %v435_v37  ;;  %v474_v58 = vmul.f32 %v861_v36, %v473_v52  ;;  %v865_v0 = vpop.eup %864  ;;  %vm486_vm14 = vweird.f32 %v863_v53 }
 0x167   : > { %866 = vrsqrt.f32 %v436_v55  ;;  %v500_v2 = vmul.f32 %v865_v0, %v437_v40  ;;  %vm487_vm0 = vmor %vm485_vm15, %vm486_vm14  ;;  %vm495_vm2 = vweird.f32 %v436_v55  ;;  %vm506_vm6 = vweird.f32 %v865_v0 }
 0x168   : > { %v481_v61 = vmul.f32 %v863_v53, %v480_v57  ;;  %v478_v63 = vsel %vm477_vm13, %v861_v36, %v474_v58  ;;  %868 = vrsqrt.f32 %v438_v59  ;;  %vm507_vm7 = vmor %vm505_vm5, %vm506_vm6 }
 0x169   : > { %745 = vmatmul.msk.f32.gmra.mxu2 %vm520_vm3, %v478_v63  ;;  %v501_v7 = vmul.f32 %v865_v0, %v500_v2 }
 0x16a   : > { %v482_v1 = vmul.f32 0.5, %v481_v61 }
 0x16b   : > { %v502_v12 = vmul.f32 0.5, %v501_v7 }
 0x16c   : > { %v483_v3 = vsub.f32 1.5, %v482_v1 }
 0x16d   : > { %v867_v4 = vpop.eup %866  ;;  %v503_v18 = vsub.f32 1.5, %v502_v12 }
 0x16e   : > { %v490_v5 = vmul.f32 %v867_v4, %v436_v55  ;;  %v484_v6 = vmul.f32 %v863_v53, %v483_v3  ;;  %v869_v10 = vpop.eup %868  ;;  %vm496_vm1 = vweird.f32 %v867_v4 }
 0x16f   : > { %v510_v14 = vmul.f32 %v869_v10, %v438_v59  ;;  %vm497_vm4 = vmor %vm495_vm2, %vm496_vm1  ;;  %v504_v20 = vmul.f32 %v865_v0, %v503_v18  ;;  %vm516_vm9 = vweird.f32 %v869_v10 }
 0x170   : > { %v491_v8 = vmul.f32 %v867_v4, %v490_v5  ;;  %v488_v9 = vsel %vm487_vm0, %v863_v53, %v484_v6  ;;  %vm517_vm10 = vmor %vm515_vm8, %vm516_vm9 }
 0x171   : > { %746 = vmatmul.msk.f32.gmra.mxu2 %vm520_vm3, %v488_v9  ;;  %v511_v16 = vmul.f32 %v869_v10, %v510_v14  ;;  %v508_v22 = vsel %vm507_vm7, %v865_v0, %v504_v20 }
 0x172   : > { %v492_v11 = vmul.f32 0.5, %v491_v8 }
 0x173   : > { %v512_v19 = vmul.f32 0.5, %v511_v16 }
 0x174   : > { %v493_v13 = vsub.f32 1.5, %v492_v11 }
 0x175   : > { %v513_v21 = vsub.f32 1.5, %v512_v19 }
 0x176   : > { %v494_v15 = vmul.f32 %v867_v4, %v493_v13 }
 0x177   : > { %v514_v23 = vmul.f32 %v869_v10, %v513_v21 }
 0x178   : > { %v498_v17 = vsel %vm497_vm4, %v867_v4, %v494_v15 }
 0x179   : > { %747 = vmatmul.msk.f32.gmra.mxu2 %vm520_vm3, %v498_v17  ;;  %v518_v24 = vsel %vm517_vm10, %v869_v10, %v514_v23 }
 0x181   : > { %748 = vmatmul.msk.f32.gmra.mxu2 %vm520_vm3, %v508_v22 }
 0x189   : > { %749 = vmatmul.msk.f32.gmra.mxu2 %vm520_vm3, %v518_v24 }
 0x1d4   : > { %v566_v26 = vpop.f32.mrf.mxu2 }
 0x1d5   : > { %v590_v27 = vmul.f32 %v566_v26, %v1185_v41 }
 0x1d7   : > { %v602_v29 = vmul.f32 %v852_v25, %v590_v27 }
 0x1d9   : > { %v614_v30 = vadd.f32 %v853_v28, %v602_v29 }
 0x1db   : > { %622 = vst [vmem:[%s1236_s26] sm:$0xff] %v614_v30 }
 0x1dc   : > { %v569_v31 = vpop.f32.mrf.mxu2 }
 0x1dd   : > { %v591_v32 = vmul.f32 %v569_v31, %v1189_v45 }
 0x1df   : > { %v603_v33 = vmul.f32 %v852_v25, %v591_v32 }
 0x1e1   : > { %v615_v34 = vadd.f32 %v853_v28, %v603_v33 }
 0x1e3   : > { %623 = vst [vmem:[%s1236_s26 + $0x8] sm:$0xff] %v615_v34 }
 0x1e4   : > { %v572_v41 = vpop.f32.mrf.mxu2 }
 0x1e5   : > { %v592_v35 = vmul.f32 %v572_v41, %v1195_v50 }
 0x1e7   : > { %v604_v36 = vmul.f32 %v852_v25, %v592_v35 }
 0x1e9   : > { %v616_v37 = vadd.f32 %v853_v28, %v604_v36 }
 0x1eb   : > { %624 = vst [vmem:[%s1236_s26 + $0x10] sm:$0xff] %v616_v37 }
 0x1ec   : > { %v575_v38 = vpop.f32.mrf.mxu2 }
 0x1ed   : > { %v593_v39 = vmul.f32 %v575_v38, %v1203_v56 }
 0x1ef   : > { %v605_v40 = vmul.f32 %v852_v25, %v593_v39 }
 0x1f1   : > { %v617_v42 = vadd.f32 %v853_v28, %v605_v40 }
 0x1f3   : > { %625 = vst [vmem:[%s1236_s26 + $0x18] sm:$0xff] %v617_v42 }
 0x1f4   : > { %v578_v43 = vpop.f32.mrf.mxu2 }
 0x1f5   : > { %v594_v45 = vmul.f32 %v578_v43, %v1209_v60 }
 0x1f7   : > { %v606_v44 = vmul.f32 %v852_v25, %v594_v45 }
 0x1f9   : > { %v618_v46 = vadd.f32 %v853_v28, %v606_v44 }
 0x1fb   : > { %626 = vst [vmem:[%s1236_s26 + $0x20] sm:$0xff] %v618_v46 }
 0x1fc   : > { %v581_v50 = vpop.f32.mrf.mxu2 }
 0x1fd   : > { %v595_v47 = vmul.f32 %v581_v50, %v1214_v62 }
 0x1ff   : > { %v607_v49 = vmul.f32 %v852_v25, %v595_v47 }
 0x201   : > { %v619_v51 = vadd.f32 %v853_v28, %v607_v49 }
 0x203   : > { %627 = vst [vmem:[%s1236_s26 + $0x28] sm:$0xff] %v619_v51 }
 0x204   : > { %v584_v56 = vpop.f32.mrf.mxu2 }
 0x205   : > { %v596_v52 = vmul.f32 %v584_v56, %v1193_v48 }
 0x207   : > { %v608_v53 = vmul.f32 %v852_v25, %v596_v52 }
 0x209   : > { %v620_v55 = vadd.f32 %v853_v28, %v608_v53 }
 0x20b   : > { %628 = vst [vmem:[%s1236_s26 + $0x30] sm:$0xff] %v620_v55 }
 0x20c   : > { %v587_v60 = vpop.f32.mrf.mxu2 }
 0x20d   : > { %v597_v62 = vmul.f32 %v587_v60, %v1201_v54 }
 0x20f   : > { %v609_v57 = vmul.f32 %v852_v25, %v597_v62 }
 0x211   : > { %v621_v58 = vadd.f32 %v853_v28, %v609_v57 }
 0x213   : > { %629 = vst [vmem:[%s1236_s26 + $0x38] sm:$0xff] %v621_v58 }
 0x214   : > { %957 = shalt.err (!%p954_p8)
}
 0x215   : > { %s1006_s17 = smov 128   ;;  %s1007_s26 = smov 8  }
 0x216   : > { %796 = dma.vmem_to_hbm [thread:$0]  (%p1081_p5), %s644_s12, 1024, %s646_s13, %s631_s14, %s1006_s17, %s1006_s17, %s1007_s26  }
 0x217 PF: > { %p813_p9 = scmp.ge.s32.totalorder %s1000_s24, 2  ;;  %s660_s28 = sand.u32 1, %s988_s21  }
 0x218   : > { %s661_s29 = scalar_lea.sflag [#allocation4], %s660_s28 }
 0x219   : > { %p806_p10 = pnand %p813_p9, %p1085_p6 }
 0x21b   : > { %p807_p11 = pneg %p806_p10 }
 0x21d   : > { %983 = dma.done.wait (%p807_p11), %s661_s29, 1024  }
 0x21e   : > { %985 = vsyncadd (%p807_p11), %s661_s29, 4294966272  ;;  %p18_p12 = scmp.ge.s32.totalorder %s1068_s27, 4   ;;  %s1297_s21 = smov %s992_s22 }
 0x21f   : > { %s1298_s22 = smov %s996_s23  ;;  %s1299_s23 = smov %s1079_s30 }
 0x220   : > { %s1300_s24 = smov %s1068_s27  ;;  %20 = sbr.rel (!%p18_p12) target bundleno = 5 (0x5), region = 88 }
 0x225   :  { %667 = vsyncpa [#allocation3], 1 }
 0x226   :  { %669 = vsyncpa [#allocation3 + $0x1], 1 }
 0x227   :  { %670 = vsyncpa [#allocation6], 1 }
 0x228   :  { %671 = vsyncpa [#allocation4], 1 }
 0x229   :  { %673 = vsyncpa [#allocation4 + $0x1], 1 }

</bundles_post_ra>
